<compile_context>
chip_gen: v7x
topology: tpu7x:2x2x1
jax: 0.10.0
libtpu: 0.0.40
codegen_flags: <defaults>
</compile_context>

<pallas_src>
import numpy as np
import jax
import jax.numpy as jnp
from jax.experimental import pallas as pl
from jax.experimental.pallas import tpu as pltpu

NCORES = 2      # per-core partial sums (uses both TCs on v7x; harmless elsewhere)
_OUT_SUB = 8    # sublane-padded per-core output block: (8, 128)


def make_center_weight(center_range: float, boundary: int) -> jnp.ndarray:
    """Deterministic weight map, identical to the PyTorch __init__ loop."""
    cx = (boundary - 1) // 2
    cy = (boundary - 1) // 2
    ii = np.arange(boundary)[:, None].astype(np.float64)
    jj = np.arange(boundary)[None, :].astype(np.float64)
    w = np.sqrt((ii - cx) ** 2 + (jj - cy) ** 2) / (10.0 * center_range / boundary)
    return jnp.asarray(w, dtype=jnp.float32)  # (boundary, boundary)


def _make_kernel(use_weight: bool):
    """Partial weighted sum-of-squares kernel. Writes one partial per core."""
    if use_weight:
        def kernel(p_ref, r_ref, w_ref, out_ref, acc_ref):
            i = pl.program_id(1)

            @pl.when(i == 0)
            def _():
                acc_ref[...] = jnp.zeros_like(acc_ref)

            d = (p_ref[...].astype(jnp.float32)
                 - r_ref[...].astype(jnp.float32)) * w_ref[...]
            acc_ref[...] += d * d        # pure VPU, no per-step reduction

            @pl.when(i == pl.num_programs(1) - 1)
            def _():
                s = jnp.sum(acc_ref[...])          # single cross-lane reduce
                out_ref[...] = jnp.full(out_ref.shape, s, dtype=out_ref.dtype)
        return kernel

    def kernel(p_ref, r_ref, out_ref, acc_ref):
        i = pl.program_id(1)

        @pl.when(i == 0)
        def _():
            acc_ref[...] = jnp.zeros_like(acc_ref)

        d = p_ref[...].astype(jnp.float32) - r_ref[...].astype(jnp.float32)
        acc_ref[...] += d * d

        @pl.when(i == pl.num_programs(1) - 1)
        def _():
            s = jnp.sum(acc_ref[...])
            out_ref[...] = jnp.full(out_ref.shape, s, dtype=out_ref.dtype)
    return kernel


def _choose_tm(rows: int, width: int) -> int:
    """Rows per block: ~1 MiB/input block, multiple of 8, capped at 1024."""
    target_rows = max(8, (1 << 20) // (4 * width))
    tm = min(1024, target_rows)
    tm = max(8, (tm // 8) * 8)
    if rows <= tm:
        tm = max(8, ((rows + 7) // 8) * 8)
    return tm


def _pad_rows(x2d: jnp.ndarray, rows_padded: int) -> jnp.ndarray:
    rows = x2d.shape[0]
    if rows_padded > rows:
        x2d = jnp.pad(x2d, ((0, rows_padded - rows), (0, 0)))
    return x2d


def _sq_sum_partials(p2d, r2d, w2d, tm, blocks_per_core):
    """Returns (NCORES,) per-core partial sums of the (weighted) squared diff."""
    rows, width = p2d.shape
    use_weight = w2d is not None
    kernel = _make_kernel(use_weight)

    def blk(c, i):
        return (c * blocks_per_core + i, 0)

    in_specs = [pl.BlockSpec((tm, width), blk),
                pl.BlockSpec((tm, width), blk)]
    args = [p2d, r2d]
    if use_weight:
        # Constant block index -> the weight is DMA'd once and stays resident.
        in_specs.append(pl.BlockSpec((1, width), lambda c, i: (0, 0)))
        args.append(w2d)

    out = pl.pallas_call(
        kernel,
        out_shape=jax.ShapeDtypeStruct((NCORES * _OUT_SUB, 128), jnp.float32),
        grid_spec=pltpu.PrefetchScalarGridSpec(
            num_scalar_prefetch=0,
            grid=(NCORES, blocks_per_core),
            in_specs=in_specs,
            out_specs=pl.BlockSpec((_OUT_SUB, 128), lambda c, i: (c, 0)),
            scratch_shapes=[pltpu.VMEM((tm, width), jnp.float32)],
        ),
        compiler_params=pltpu.CompilerParams(
            dimension_semantics=("parallel", "arbitrary"),
        ),
    )(*args)
    # Each core replicated its partial over its (8, 128) block; pick one lane.
    return out[::_OUT_SUB, 0]


def center_weight_mse(pred: jnp.ndarray,
                      real: jnp.ndarray,
                      center_range: float,
                      boundary: int) -> jnp.ndarray:
    """Pallas implementation of CenterWeightMSE.forward. Returns a scalar f32."""
    assert pred.shape == real.shape, "pred and real must have the same shape"
    H, W = int(real.shape[-2]), int(real.shape[-1])
    total = int(np.prod(pred.shape))

    if (H, W) == (boundary, boundary):
        # Weighted branch: one flattened image per row (lane-dense width H*W).
        width = H * W
        rows = total // width
        p2d = pred.reshape(rows, width)
        r2d = real.reshape(rows, width)
        w2d = make_center_weight(center_range, boundary).reshape(1, width)
    else:
        # Plain-MSE branch: fully flatten to 128-lane rows, zero-pad the tail
        # (zero padding in both operands contributes nothing to the sum).
        width = 128
        rows = -(-total // width)
        pad = rows * width - total
        p2d = jnp.pad(pred.reshape(-1), (0, pad)).reshape(rows, width)
        r2d = jnp.pad(real.reshape(-1), (0, pad)).reshape(rows, width)
        w2d = None

    tm = _choose_tm(rows, width)
    blocks_per_core = -(-rows // (NCORES * tm))
    rows_padded = NCORES * blocks_per_core * tm
    p2d = _pad_rows(p2d, rows_padded)
    r2d = _pad_rows(r2d, rows_padded)

    partials = _sq_sum_partials(p2d, r2d, w2d, tm, blocks_per_core)
    return jnp.sum(partials) / jnp.float32(total)


def center_weight_mse_ref(pred, real, center_range, boundary):
    """Pure-JAX reference for validation."""
    H, W = real.shape[-2], real.shape[-1]
    if (H, W) == (boundary, boundary):
        w = make_center_weight(center_range, boundary)
        w = w.reshape((1,) * (pred.ndim - 2) + (boundary, boundary))
        return jnp.mean(((pred - real) * w) ** 2)
    return jnp.mean((pred - real) ** 2)


if __name__ == "__main__":
    center_range = 4.0
    boundary = 16

    key = jax.random.PRNGKey(0)
    k1, k2, k3, k4 = jax.random.split(key, 4)

    # Matching-shape branch: NCHW (N=2, C=4, H=16, W=16).
    pred = jax.random.normal(k1, (2, 4, boundary, boundary), dtype=jnp.float32)
    real = jax.random.normal(k2, (2, 4, boundary, boundary), dtype=jnp.float32)

    out = center_weight_mse(pred, real, center_range, boundary)
    out = jax.block_until_ready(out)
    ref = center_weight_mse_ref(pred, real, center_range, boundary)
    np.testing.assert_allclose(np.asarray(out), np.asarray(ref), rtol=1e-5, atol=1e-6)

    # Non-matching spatial shape branch: falls back to plain MSE.
    pred2 = jax.random.normal(k3, (2, 4, 8, 8), dtype=jnp.float32)
    real2 = jax.random.normal(k4, (2, 4, 8, 8), dtype=jnp.float32)

    out2 = center_weight_mse(pred2, real2, center_range, boundary)
    out2 = jax.block_until_ready(out2)
    ref2 = center_weight_mse_ref(pred2, real2, center_range, boundary)
    np.testing.assert_allclose(np.asarray(out2), np.asarray(ref2), rtol=1e-5, atol=1e-6)

    print("KERNEL_OK")
</pallas_src>

<mosaic_0001>
module attributes {stable_mosaic.version = 11 : i64} {
  func.func @kernel(%arg0: i32, %arg1: i32, %arg2: memref<8x256xf32, #tpu.memory_space<vmem>>, %arg3: memref<8x256xf32, #tpu.memory_space<vmem>>, %arg4: memref<1x256xf32, #tpu.memory_space<vmem>>, %arg5: memref<8x128xf32, #tpu.memory_space<vmem>>, %arg6: memref<8x256xf32, #tpu.memory_space<vmem>>) attributes {dimension_semantics = [#tpu.dimension_semantics<parallel>, #tpu.dimension_semantics<arbitrary>], iteration_bounds = array<i64: 2, 1>, scalar_prefetch = 0 : i64, scratch_operands = 1 : i64, tpu.core_type = #tpu.core_type<tc>, window_params = [{transform_indices = @transform_0, window_bounds = array<i64: 8, 256>}, {transform_indices = @transform_1, window_bounds = array<i64: 8, 256>}, {pipeline_mode = #tpu.pipeline_mode<synchronous>, transform_indices = @transform_2, window_bounds = array<i64: 1, 256>}, {transform_indices = @transform_3, window_bounds = array<i64: 8, 128>}]} {
    %c0_i32 = arith.constant 0 : i32
    %0 = arith.cmpi eq, %arg1, %c0_i32 : i32
    %1 = arith.extui %0 : i1 to i32
    %c0_i32_0 = arith.constant 0 : i32
    %2 = arith.cmpi ne, %1, %c0_i32_0 : i32
    scf.if %2 {
      %cst = arith.constant 0.000000e+00 : f32
      %16 = vector.broadcast %cst : f32 to vector<8x256xf32>
      %c0_12 = arith.constant 0 : index
      %c0_13 = arith.constant 0 : index
      %17 = vector.load %arg6[%c0_12, %c0_13] : memref<8x256xf32, #tpu.memory_space<vmem>>, vector<8x256xf32>
      tpu.vector_store %arg6[%c0_12, %c0_13], %16 {strides = array<i32>} : memref<8x256xf32, #tpu.memory_space<vmem>>, vector<8x256xf32>,
    } else {
    }
    %c0 = arith.constant 0 : index
    %c0_1 = arith.constant 0 : index
    %3 = vector.load %arg2[%c0, %c0_1] : memref<8x256xf32, #tpu.memory_space<vmem>>, vector<8x256xf32>
    %c0_2 = arith.constant 0 : index
    %c0_3 = arith.constant 0 : index
    %4 = vector.load %arg3[%c0_2, %c0_3] : memref<8x256xf32, #tpu.memory_space<vmem>>, vector<8x256xf32>
    %5 = arith.subf %3, %4 : vector<8x256xf32>
    %c0_4 = arith.constant 0 : index
    %c0_5 = arith.constant 0 : index
    %6 = vector.load %arg4[%c0_4, %c0_5] : memref<1x256xf32, #tpu.memory_space<vmem>>, vector<1x256xf32>
    %7 = vector.broadcast %6 : vector<1x256xf32> to vector<8x256xf32>
    %8 = arith.mulf %5, %7 : vector<8x256xf32>
    %c0_6 = arith.constant 0 : index
    %c0_7 = arith.constant 0 : index
    %9 = vector.load %arg6[%c0_6, %c0_7] : memref<8x256xf32, #tpu.memory_space<vmem>>, vector<8x256xf32>
    %10 = arith.mulf %8, %8 : vector<8x256xf32>
    %11 = arith.addf %9, %10 : vector<8x256xf32>
    %c0_8 = arith.constant 0 : index
    %c0_9 = arith.constant 0 : index
    %12 = vector.load %arg6[%c0_8, %c0_9] : memref<8x256xf32, #tpu.memory_space<vmem>>, vector<8x256xf32>
    tpu.vector_store %arg6[%c0_8, %c0_9], %11 {strides = array<i32>} : memref<8x256xf32, #tpu.memory_space<vmem>>, vector<8x256xf32>,
    %c0_i32_10 = arith.constant 0 : i32
    %13 = arith.cmpi eq, %arg1, %c0_i32_10 : i32
    %14 = arith.extui %13 : i1 to i32
    %c0_i32_11 = arith.constant 0 : i32
    %15 = arith.cmpi ne, %14, %c0_i32_11 : i32
    scf.if %15 {
      %c0_12 = arith.constant 0 : index
      %c0_13 = arith.constant 0 : index
      %16 = vector.load %arg6[%c0_12, %c0_13] : memref<8x256xf32, #tpu.memory_space<vmem>>, vector<8x256xf32>
      %17 = vector.shape_cast %16 : vector<8x256xf32> to vector<1x8x256xf32>
      %cst = arith.constant dense<0.000000e+00> : vector<1xf32>
      %18 = vector.multi_reduction <add>, %17, %cst [1, 2] : vector<1x8x256xf32> to vector<1xf32>
      %19 = vector.shape_cast %18 : vector<1xf32> to vector<1x1x1xf32>
      %20 = vector.extract %19[0, 0, 0] : f32 from vector<1x1x1xf32>
      %21 = vector.broadcast %20 : f32 to vector<8x128xf32>
      %c0_14 = arith.constant 0 : index
      %c0_15 = arith.constant 0 : index
      %22 = vector.load %arg5[%c0_14, %c0_15] : memref<8x128xf32, #tpu.memory_space<vmem>>, vector<8x128xf32>
      tpu.vector_store %arg5[%c0_14, %c0_15], %21 {strides = array<i32>} : memref<8x128xf32, #tpu.memory_space<vmem>>, vector<8x128xf32>,
    } else {
    }
    return
  }
  func.func @transform_0(%arg0: i32, %arg1: i32) -> (i32, i32) {
    %c1_i32 = arith.constant 1 : i32
    %0 = arith.muli %arg0, %c1_i32 : i32
    %1 = arith.addi %0, %arg1 : i32
    %c0_i32 = arith.constant 0 : i32
    %c0_i32_0 = arith.constant 0 : i32
    return %1, %c0_i32 : i32, i32
  }
  func.func @transform_1(%arg0: i32, %arg1: i32) -> (i32, i32) {
    %c1_i32 = arith.constant 1 : i32
    %0 = arith.muli %arg0, %c1_i32 : i32
    %1 = arith.addi %0, %arg1 : i32
    %c0_i32 = arith.constant 0 : i32
    %c0_i32_0 = arith.constant 0 : i32
    return %1, %c0_i32 : i32, i32
  }
  func.func @transform_2(%arg0: i32, %arg1: i32) -> (i32, i32) {
    %c0_i32 = arith.constant 0 : i32
    %c0_i32_0 = arith.constant 0 : i32
    %c0_i32_1 = arith.constant 0 : i32
    return %c0_i32, %c0_i32_0 : i32, i32
  }
  func.func @transform_3(%arg0: i32, %arg1: i32) -> (i32, i32) {
    %c0_i32 = arith.constant 0 : i32
    %c0_i32_0 = arith.constant 0 : i32
    return %arg0, %c0_i32 : i32, i32
  }
}

</mosaic_0001>

<bundles_post_ra>
// kernel: tpu_custom_call.1
= control target key start
LH: loop header
LB: loop body
LE: loop exit
PB: predicated region body
PF: predicated region fallthrough
CT: control target
= control target key end

     0   :  { %8 = vsyncpa [#allocation4], 0  ;;  %s897_s0 = inlined_call_operand.hbm [shape: f32[16,256], index: 0, kind: input, shape index: {}]   ;;  %s898_s1 = inlined_call_operand.hbm [shape: f32[16,256], index: 1, kind: input, shape index: {}]   ;;  %s899_s2 = inlined_call_operand.vmem [shape: f32[1,256], index: 2, kind: input, shape index: {}]   ;;  %s900_s3 = inlined_call_operand.hbm [shape: f32[16,128], index: 3, kind: output, shape index: {}]  }
   0x1   :  { %10 = vsyncpa [#allocation4 + $0x1], 0 }
   0x2   :  { %11 = vsyncpa [#allocation7], 0 }
   0x3   :  { %13 = vsyncpa [#allocation7 + $0x1], 0 }
   0x4   :  { %14 = vsyncpa [#allocation5], 0 }
   0x5   :  { %16 = vsyncpa [#allocation5 + $0x1], 0  ;;  %s673_s12 = smov 0   ;;  %s675_s13 = smov 0  }
   0x6   :  { %s677_s14 = smov 0   ;;  %s679_s15 = smov 0  }
   0x7   :  { %s681_s16 = smov 0   ;;  %s683_s17 = smov 0  }
   0x8 LB: > { %s413_s18 = sadd.s32 4294967295, %s648_s17   ;;  %s414_s19 = sadd.s32 4294967294, %s648_s17   ;;  %s648_s17 = sphi %s683_s17, %s22_s17   ;;  %s644_s16 = sphi %s681_s16, %s920_s16   ;;  %s640_s15 = sphi %s679_s15, %s919_s15   ;;  %s636_s14 = sphi %s677_s14, %s918_s14   ;;  %s632_s13 = sphi %s675_s13, %s917_s13   ;;  %s628_s12 = sphi %s673_s12, %s916_s12  }
   0x9   : > { %s34_s20 = sadd.s32 1, %s644_s16  ;;  %s43_s21 = sadd.s32 1, %s636_s14 }
   0xa   : > { %p36_p0 = scmp.ge.s32.totalorder %s34_s20, 2  ;;  %p50_p1 = scmp.ne.s32.totalorder %s636_s14, %s632_s13 }
   0xb   : > { %p51_p2 = scmp.eq.s32.totalorder %s648_s17, 0  ;;  %p56_p3 = scmp.ne.s32.totalorder %s632_s13, %s628_s12 }
   0xc   : > { %s922_s20 = smov (%p36_p0, %s34_s20), 0  ;;  %p57_p5 = scmp.eq.s32.totalorder %s413_s18, 0 }
   0xd   : > { %p714_p4 = por %p51_p2, %p50_p1  ;;  %s40_s23 = ssub.s32 %s644_s16, %s922_s20 }
   0xe   : > { %p129_p6 = scmp.eq.s32.totalorder %s413_s18, 1  ;;  %p41_p7 = scmp.eq.s32.totalorder %s40_s23, 0 }
   0xf   : > { %p720_p8 = por %p57_p5, %p56_p3  ;;  %p135_p10 = scmp.eq.s32.totalorder %s414_s19, 1 }
  0x10   : > { %p724_p9 = por %p129_p6, %p50_p1  ;;  %p452_p13 = scmp.lt.s32.totalorder %s648_s17, 2 }
  0x11   : > { %s904_s24 = scalar_select %p720_p8, 1, 0 }
  0x12   : > { %s905_s25 = scalar_select %p724_p9, 1, 0 }
  0x13   : > { %s729_s26 = scalar_select %p41_p7, %s636_s14, %s43_s21  }
  0x14   : > { %p731_p11 = por %p135_p10, %p56_p3  ;;  %s738_s28 = sand.u32 1, %s636_s14  }
  0x15   : > { %s417_s29 = sshll.u32 %s738_s28, 4  ;;  %s431_s30 = sshll.u32 %s644_s16, 8 }
  0x16   : > { %s906_s27 = scalar_select %p731_p11, 1, 0 }
  0x17   : > { %s747_s6 = scalar_lea.hbm %s897_s0, %s431_s30  ;;  %s162_s7 = scalar_lea.vmem [#allocation3], %s417_s29 }
  0x18   : > { %s171_s8 = sshll.u32 %s162_s7, 4  ;;  %p755_p0 = pnand %p452_p13, %p714_p4  ;;  %s751_s8 = int_to_ptr.vmem [resolvable:$true] %s171_s8 }
  0x19   : > { %s159_s10 = scalar_lea.sflag [#allocation4], %s738_s28  ;;  %s502_s11 = scalar_lea.hbm %s747_s6, 256 }
  0x1a   : > { %p503_p3 = scmp.ne.s32.totalorder %s747_s6, %s502_s11  ;;  %p504_p5 = pneg %p755_p0 }
  0x1b   : > { %s507_s21 = scalar_lea.hbm %s897_s0, 512  ;;  %p508_p4 = scmp.lt.u32.totalorder %s747_s6, %s897_s0 }
  0x1c   : > { %p505_p6 = pnand %p504_p5, %p503_p3  ;;  %p509_p10 = scmp.lt.u32.totalorder %s507_s21, %s502_s11 }
  0x1d   : > { %p511_p12 = scmp.lt.u32.totalorder %s502_s11, %s747_s6 }
  0x1e   : > { %p506_p7 = pneg %p505_p6  ;;  %p510_p13 = por %p509_p10, %p508_p4 }
  0x20   : > { %p512_p1 = por %p511_p12, %p510_p13 }
  0x22   : > { %p513_p2 = pnand %p512_p1, %p506_p7 }
  0x24   : > { %516 = shalt.err (!%p513_p2)
}
  0x25   : > { %s517_s4 = scalar_lea.vmem %s751_s8, 256  ;;  %s650_s5 = smov [#allocation3]  }
  0x26   : > { %p518_p3 = scmp.ne.s32.totalorder %s751_s8, %s517_s4  ;;  %s522_s7 = sshll.u32 %s650_s5, 4  ;;  %s523_s7 = int_to_ptr.vmem [resolvable:$false] %s522_s7 }
  0x27   : > { %s524_s18 = scalar_lea.vmem %s523_s7, 512  ;;  %p525_p9 = scmp.lt.s32.totalorder %s751_s8, %s523_s7 }
  0x28   : > { %p520_p6 = pnand %p518_p3, %p504_p5  ;;  %p526_p4 = scmp.lt.s32.totalorder %s524_s18, %s517_s4 }
  0x2a   : > { %p521_p11 = pneg %p520_p6  ;;  %p527_p10 = por %p526_p4, %p525_p9 }
  0x2c   : > { %p528_p12 = pnand %p527_p10, %p521_p11 }
  0x2e   : > { %531 = shalt.err (!%p528_p12)
}
  0x2f   : > { %444 = dma.hbm_to_vmem [thread:$0]  (!%p755_p0), %s747_s6, 256, %s751_s8, %s159_s10  }
  0x30   : > { %p908_p1 = scmp.lt.s32.totalorder %s648_s17, 3  ;;  %p909_p2 = scmp.ge.s32.totalorder %s648_s17, 1 }
  0x31   : > { %s800_s22 = scalar_lea.hbm %s898_s1, %s431_s30  ;;  %s182_s23 = scalar_lea.vmem [#allocation6], %s417_s29 }
  0x32   : > { %p791_p7 = pnand %p909_p2, %p908_p1  ;;  %s191_s4 = sshll.u32 %s182_s23, 4  ;;  %s192_s4 = int_to_ptr.vmem [resolvable:$true] %s191_s4 }
  0x33   : > { %s179_s6 = scalar_lea.sflag [#allocation7], %s738_s28  ;;  %s532_s8 = scalar_lea.hbm %s800_s22, 256 }
  0x34   : > { %s910_s11 = scalar_select %p791_p7, 1, 0 }
  0x35   : > { %p533_p9 = scmp.ne.s32.totalorder %s800_s22, %s532_s8  ;;  %s537_s30 = scalar_lea.hbm %s898_s1, 512 }
  0x36   : > { %p538_p3 = scmp.lt.u32.totalorder %s800_s22, %s898_s1  ;;  %p539_p6 = scmp.lt.u32.totalorder %s537_s30, %s532_s8 }
  0x37   : > { %p535_p11 = pnand %p533_p9, %p504_p5  ;;  %p541_p10 = scmp.lt.u32.totalorder %s532_s8, %s800_s22 }
  0x38   : > { %p540_p4 = por %p539_p6, %p538_p3 }
  0x39   : > { %p536_p13 = pneg %p535_p11 }
  0x3a   : > { %p542_p12 = por %p541_p10, %p540_p4 }
  0x3c   : > { %p543_p1 = pnand %p542_p12, %p536_p13 }
  0x3e   : > { %546 = shalt.err (!%p543_p1)
}
  0x3f   : > { %s547_s28 = scalar_lea.vmem %s192_s4, 256  ;;  %s651_s29 = smov [#allocation6]  }
  0x40   : > { %p548_p2 = scmp.ne.s32.totalorder %s192_s4, %s547_s28  ;;  %s552_s19 = sshll.u32 %s651_s29, 4  ;;  %s553_s19 = int_to_ptr.vmem [resolvable:$false] %s552_s19 }
  0x41   : > { %s554_s21 = scalar_lea.vmem %s553_s19, 512  ;;  %p555_p8 = scmp.lt.s32.totalorder %s192_s4, %s553_s19 }
  0x42   : > { %p550_p9 = pnand %p548_p2, %p504_p5  ;;  %p556_p7 = scmp.lt.s32.totalorder %s554_s21, %s547_s28 }
  0x44   : > { %p551_p11 = pneg %p550_p9  ;;  %p557_p3 = por %p556_p7, %p555_p8 }
  0x46   : > { %p558_p6 = pnand %p557_p3, %p551_p11 }
  0x48   : > { %561 = shalt.err (!%p558_p6)
}
  0x49   : > { %447 = dma.hbm_to_vmem [thread:$0]  (!%p755_p0), %s800_s22, 256, %s192_s4, %s179_s6  }
  0x4a   : > { %p911_p13 = scmp.ne.s32.totalorder %s910_s11, 0 }
  0x4b   : > { %s827_s23 = sand.u32 (!%p911_p13), 1, %s632_s13   ;;  %p912_p5 = scmp.ne.s32.totalorder (!%p911_p13), %s904_s24, 0 }
  0x4c   : > { %200 = sbr.rel (%p911_p13) target bundleno = 319 (0x13f), region = 32  ;;  %s424_s8 = sshll.u32 (!%p911_p13), %s827_s23, 4 }
  0x4d   : > { %s203_s10 = scalar_lea.sflag (!%p911_p13), [#allocation4], %s827_s23  ;;  %s206_s5 = scalar_lea.vmem (!%p911_p13), [#allocation3], %s424_s8 }
  0x53   : > { %615 = dma.done.wait (%p912_p5), %s203_s10, 256  }
  0x54   : > { %617 = vsyncadd (%p912_p5), %s203_s10, 4294967040  ;;  %s212_s9 = scalar_lea.sflag [#allocation7], %s827_s23  ;;  %s215_s22 = scalar_lea.vmem [#allocation6], %s424_s8 }
  0x55   : > { %619 = dma.done.wait (%p912_p5), %s212_s9, 256  }
  0x56   : > { %621 = vsyncadd (%p912_p5), %s212_s9, 4294967040  ;;  %v259_v0 = vlaneseq  ;;  %v251_v4 = vld [vmem:[%s206_s5] sm:$0xff]  ;;  %v252_v5 = vld [vmem:[%s206_s5 + $0x8] sm:$0xff]  ;;  %s426_s24 = sshll.u32 %s827_s23, 3  ;;  %s428_s7 = sshll.u32 %s640_s15, 7 }
  0x57   : > { %v253_v6 = vld [vmem:[%s215_s22] sm:$0xff]  ;;  %v254_v7 = vld [vmem:[%s215_s22 + $0x8] sm:$0xff]  ;;  %s242_s6 = scalar_lea.vmem [#allocation8], %s426_s24  ;;  %s850_s19 = scalar_lea.hbm %s900_s3, %s428_s7 }
  0x58   : > { %v260_v1 = vshrl.u32 %v259_v0, 7  ;;  %v255_v8 = vsub.f32 %v251_v4, %v253_v6  ;;  %v257_v9 = vld [vmem:[%s899_s2] sm:$0x3]  ;;  %v256_v10 = vsub.f32 %v252_v5, %v254_v7  ;;  %s310_s30 = sshll.u32 %s242_s6, 4  ;;  %s297_s21 = scalar_lea.sflag [#allocation5], %s827_s23  ;;  %s845_s30 = int_to_ptr.vmem [resolvable:$true] %s310_s30 }
  0x59   : > { %s562_s8 = scalar_lea.vmem %s845_s30, 128  ;;  %p913_p0 = scmp.ne.s32.totalorder %s905_s25, 0 }
  0x5a   : > { %v261_v2 = vsub.s32 0, %v260_v1  ;;  %v265_v3 = vsub.s32 1, %v260_v1  ;;  %p563_p8 = scmp.ne.s32.totalorder %s845_s30, %s562_s8  ;;  %s652_s15 = smov [#allocation8]  }
  0x5b   : > { %s566_s10 = sshll.u32 %s652_s15, 4  ;;  %s567_s10 = int_to_ptr.vmem [resolvable:$false] %s566_s10 }
  0x5c   : > { %v262_v11 = vrot.slane %v257_v9, %v261_v2  ;;  %v266_v12 = vrot.slane %v257_v9, %v265_v3  ;;  %p564_p7 = pnand %p563_p8, %p913_p0  ;;  %s568_s5 = scalar_lea.vmem %s567_s10, 256 }
  0x5d   : > { %p569_p10 = scmp.lt.s32.totalorder %s845_s30, %s567_s10  ;;  %p570_p12 = scmp.lt.s32.totalorder %s568_s5, %s562_s8 }
  0x5e   : > { %v269_v13 = vmul.f32 %v262_v11, %v255_v8  ;;  %v270_v14 = vmul.f32 %v266_v12, %v256_v10  ;;  %p565_p4 = pneg %p564_p7 }
  0x5f   : > { %p571_p1 = por %p570_p12, %p569_p10 }
  0x60   : > { %v273_v15 = vmul.f32 %v269_v13, %v269_v13  ;;  %v274_v16 = vmul.f32 %v270_v14, %v270_v14 }
  0x61   : > { %p572_p2 = pnand %p571_p1, %p565_p4 }
  0x62   : > { %v284_v17 = vadd.f32 %v274_v16, %v273_v15 }
  0x64   : > { %285 = vadd.xlane.f32.xlu0 %v284_v17 }
  0xf1   : > { %v286_v18 = vpop.xlane.xlu0 %285 }
  0xf2   : > { %v287_v19 = vrot.slane %v286_v18, 4 }
  0xf4   : > { %v288_v20 = vadd.f32 %v287_v19, %v286_v18 }
  0xf6   : > { %v289_v21 = vrot.slane %v288_v20, 2 }
  0xf8   : > { %v290_v22 = vadd.f32 %v289_v21, %v288_v20 }
  0xfa   : > { %v291_v23 = vrot.slane %v290_v22, 1 }
  0xfc   : > { %v292_v24 = vadd.f32 %v291_v23, %v290_v22 }
  0xfe   : > { %433 = vpush %v292_v24 }
 0x12f   : > { %s434_s18 = spop %433 }
 0x130   : > { %v294_v25 = vstv %s434_s18 }
 0x131   : > { %295 = vst [vmem:[%s242_s6] sm:$0xff] %v294_v25 }
 0x132   : > { %575 = shalt.err (!%p572_p2)
}
 0x133   : > { %s576_s23 = scalar_lea.hbm %s850_s19, 128  ;;  %s580_s11 = scalar_lea.hbm %s900_s3, 256 }
 0x134   : > { %p577_p9 = scmp.ne.s32.totalorder %s850_s19, %s576_s23  ;;  %p581_p6 = scmp.lt.u32.totalorder %s850_s19, %s900_s3 }
 0x135   : > { %p582_p13 = scmp.lt.u32.totalorder %s580_s11, %s576_s23  ;;  %p584_p8 = scmp.lt.u32.totalorder %s576_s23, %s850_s19 }
 0x136   : > { %p578_p11 = pnand %p577_p9, %p913_p0 }
 0x137   : > { %p583_p5 = por %p582_p13, %p581_p6 }
 0x138   : > { %p579_p3 = pneg %p578_p11 }
 0x139   : > { %p585_p7 = por %p584_p8, %p583_p5 }
 0x13b   : > { %p586_p4 = pnand %p585_p7, %p579_p3 }
 0x13d   : > { %589 = shalt.err (!%p586_p4)
}
 0x13e   : > { %439 = dma.vmem_to_hbm [thread:$0]  (%p913_p0), %s845_s30, 128, %s850_s19, %s297_s21  }
 0x13f PF: > { %s322_s6 = sand.u32 1, %s628_s12   ;;  %p914_p10 = scmp.ne.s32.totalorder %s906_s27, 0 }
 0x140   : > { %p915_p12 = scmp.ge.s32.totalorder %s648_s17, 2  ;;  %s323_s7 = scalar_lea.sflag [#allocation5], %s322_s6 }
 0x142   : > { %p449_p1 = pnand %p915_p12, %p914_p10 }
 0x144   : > { %623 = dma.done.wait (!%p449_p1), %s323_s7, 128  }
 0x145   : > { %625 = vsyncadd (!%p449_p1), %s323_s7, 4294967168  ;;  %s22_s17 = sadd.s32 1, %s648_s17   ;;  %s916_s12 = smov %s632_s13 }
 0x146   : > { %p19_p2 = scmp.ge.s32.totalorder %s22_s17, 4   ;;  %s917_s13 = smov %s636_s14 }
 0x147   : > { %s918_s14 = smov %s729_s26  ;;  %s919_s15 = smov %s644_s16 }
 0x148   : > { %s920_s16 = smov %s922_s20  ;;  %21 = sbr.rel (!%p19_p2) target bundleno = 8 (0x8), region = 98 }
 0x14f   :  { %328 = vsyncpa [#allocation4], 1 }
 0x150   :  { %330 = vsyncpa [#allocation4 + $0x1], 1 }
 0x151   :  { %331 = vsyncpa [#allocation7], 1 }
 0x152   :  { %333 = vsyncpa [#allocation7 + $0x1], 1 }
 0x153   :  { %334 = vsyncpa [#allocation5], 1 }
 0x154   :  { %336 = vsyncpa [#allocation5 + $0x1], 1 }

</bundles_post_ra>
